<compile_context>
chip_gen: v5e
topology: v5e:2x2
jax: 0.10.0
libtpu: 0.0.40
codegen_flags: <defaults>
</compile_context>

<pallas_src>
import jax
import jax.numpy as jnp
from jax.experimental import pallas as pl
from jax.experimental.pallas import tpu as pltpu

# Preferred lane extents (multiples of 128), largest first.
_LANE_CANDIDATES = (8192, 4096, 2048, 1024, 512, 256, 128)


def _undersample_kernel(a_ref, b_ref, o_ref):
    # Pure VPU elementwise multiply.  Inputs are loaded in their native
    # dtypes and promoted / cast in-kernel (no wrapper-side astype pass).
    # b_ref may be (1, tc) for broadcast masks; jnp broadcasting handles it.
    o_ref[...] = (a_ref[...] * b_ref[...]).astype(o_ref.dtype)


def _chip_tuning():
    """Return (target_tile_bytes_per_array, vmem_limit_bytes) per generation.

    Peak footprint ~= 2 pipeline buffers x 3 arrays x tile.
    """
    kind = ""
    try:
        kind = jax.devices()[0].device_kind.lower()
    except Exception:
        pass
    if "v7" in kind:                 # 64 MiB physical VMEM, 3.2 TB/s HBM
        return 4 << 20, 48 << 20
    if "v6" in kind:                 # 128 MiB physical VMEM, 1.4 TB/s HBM
        return 8 << 20, 64 << 20
    if "v5" in kind:                 # v5e/v5p: 128 MiB physical, 16/32 MiB default scoped
        return 2 << 20, 32 << 20
    # Unknown / older generation: stay within the default scoped VMEM limit.
    return 2 << 20, None


def _round_up(x: int, m: int) -> int:
    return ((x + m - 1) // m) * m


def _pick_lanes(total: int):
    """Largest preferred lane extent (multiple of 128) dividing `total`."""
    for lanes in _LANE_CANDIDATES:
        if total % lanes == 0:
            return lanes
    return None


def _pick_rows(lanes: int, itemsize: int, target_bytes: int, rows: int) -> int:
    """Row-tile extent: sized by bytes, aligned to 32 sublanes, capped at rows."""
    bytes_per_row = lanes * itemsize
    tr = max(target_bytes // bytes_per_row, 1)
    # Align to 32: sublane packing factor of the narrowest supported dtype
    # (int8/fp8 pack 32 rows per vreg, bf16 packs 16, f32 packs 8).
    tr = max((tr // 32) * 32, 32)
    if tr >= rows:
        tr = rows
    return tr


def _broadcast_inner(a_shape, b_shape):
    """If b broadcasts to a purely via leading size-1 dims (b equals a trailing
    suffix of a), return that suffix's element count, else None."""
    if len(b_shape) > len(a_shape):
        return None
    bs = (1,) * (len(a_shape) - len(b_shape)) + tuple(b_shape)
    k = 0
    while k < len(bs) and bs[k] == 1:
        k += 1
    suffix = bs[k:]
    if tuple(a_shape[len(a_shape) - len(suffix):]) != tuple(suffix):
        return None
    inner = 1
    for d in suffix:
        inner *= int(d)
    return inner


def _undersample_broadcast(a, b, inner, out_dtype, min_pallas_bytes):
    """a * b where b is a trailing-suffix broadcast mask (e.g. [1,1,H,W])."""
    orig_shape = a.shape
    outer = int(a.size) // inner
    total_bytes = (
        int(a.size) * (a.dtype.itemsize + jnp.dtype(out_dtype).itemsize)
        + int(b.size) * b.dtype.itemsize
    )
    if a.size == 0 or total_bytes < min_pallas_bytes:
        return (a * b).astype(out_dtype)

    target_tile_bytes, vmem_limit = _chip_tuning()

    a2 = a.reshape(outer, inner)
    b2 = b.reshape(1, inner)

    tc = _pick_lanes(inner)  # caller guarantees inner % 128 == 0
    max_itemsize = max(
        a.dtype.itemsize, b.dtype.itemsize, jnp.dtype(out_dtype).itemsize
    )
    tr = _pick_rows(tc, max_itemsize, target_tile_bytes, outer)

    n_cols = inner // tc
    n_rows = pl.cdiv(outer, tr)

    out2 = pl.pallas_call(
        _undersample_kernel,
        out_shape=jax.ShapeDtypeStruct((outer, inner), out_dtype),
        # Column axis outermost: the mask block index (0, j) is constant over
        # the inner row sweep, so the pipeline skips re-fetching the mask —
        # it is read from HBM once per column block instead of B*C times.
        grid=(n_cols, n_rows),
        in_specs=[
            pl.BlockSpec((tr, tc), lambda j, i: (i, j)),
            pl.BlockSpec((1, tc), lambda j, i: (0, j)),
        ],
        out_specs=pl.BlockSpec((tr, tc), lambda j, i: (i, j)),
        compiler_params=pltpu.CompilerParams(
            dimension_semantics=("parallel", "parallel"),
            vmem_limit_bytes=vmem_limit,
        ),
    )(a2, b2)

    return out2.reshape(orig_shape)


def undersample(a: jax.Array, b: jax.Array, *, min_pallas_bytes: int = 256 * 1024) -> jax.Array:
    """Compute a * b (elementwise undersampling mask) with a Pallas TPU kernel.

    a: k-space data (NCHW in the original module; any rank works).
    b: sampling mask, same shape as `a` or broadcastable via leading size-1
       dims (e.g. [1, 1, H, W]).  Keep the mask narrow in HBM (int8 / bf16);
       promotion happens in-kernel and the kernel is purely HBM-bound.
    min_pallas_bytes: below this total HBM traffic, fall back to plain XLA.
    """
    out_dtype = jnp.promote_types(a.dtype, b.dtype)

    if a.shape != b.shape:
        inner = _broadcast_inner(a.shape, b.shape)
        if inner is not None and inner % 128 == 0 and int(a.size) >= inner:
            return _undersample_broadcast(a, b, inner, out_dtype, min_pallas_bytes)
        if inner is not None:
            # Broadcast mask whose suffix is not lane-friendly: materialize it
            # and use the lane-dense flat path (correct, slightly more traffic).
            b = jnp.broadcast_to(b, a.shape)
        else:
            # General broadcasting (rare for this module): let XLA handle it.
            return (a * b).astype(out_dtype)

    orig_shape = a.shape
    total = int(a.size)
    total_bytes = total * (
        a.dtype.itemsize + b.dtype.itemsize + jnp.dtype(out_dtype).itemsize
    )
    if total == 0 or total_bytes < min_pallas_bytes:
        # Tiny op: XLA's fused elementwise is strictly better here.
        return (a * b).astype(out_dtype)

    target_tile_bytes, vmem_limit = _chip_tuning()

    # Contiguous flatten (free reshape).  If the element count is not a
    # multiple of 128, pad up to the next multiple of 1024 (8x128) so stores
    # stay wide unmasked vst, then slice the result back.
    a_flat = a.reshape(-1)
    b_flat = b.reshape(-1)
    padded_total = total
    lanes = _pick_lanes(total)
    if lanes is None:
        padded_total = _round_up(total, 1024)
        pad = padded_total - total
        a_flat = jnp.pad(a_flat, (0, pad))
        b_flat = jnp.pad(b_flat, (0, pad))
        lanes = _pick_lanes(padded_total)

    rows = padded_total // lanes
    a2 = a_flat.reshape(rows, lanes)
    b2 = b_flat.reshape(rows, lanes)

    max_itemsize = max(
        a.dtype.itemsize, b.dtype.itemsize, jnp.dtype(out_dtype).itemsize
    )
    tr = _pick_rows(lanes, max_itemsize, target_tile_bytes, rows)

    out2 = pl.pallas_call(
        _undersample_kernel,
        out_shape=jax.ShapeDtypeStruct((rows, lanes), out_dtype),
        grid=(pl.cdiv(rows, tr),),
        in_specs=[
            pl.BlockSpec((tr, lanes), lambda i: (i, 0)),
            pl.BlockSpec((tr, lanes), lambda i: (i, 0)),
        ],
        out_specs=pl.BlockSpec((tr, lanes), lambda i: (i, 0)),
        compiler_params=pltpu.CompilerParams(
            dimension_semantics=("parallel",),
            vmem_limit_bytes=vmem_limit,
        ),
    )(a2, b2)

    out_flat = out2.reshape(-1)
    if padded_total != total:
        out_flat = out_flat[:total]
    return out_flat.reshape(orig_shape)


if __name__ == "__main__":
    key = jax.random.PRNGKey(0)
    ka, kb, kc, kd = jax.random.split(key, 4)

    # Small NCHW shapes: batch=2, channels=4, spatial=16x16
    a = jax.random.normal(ka, (2, 4, 16, 16), dtype=jnp.float32)
    # b plays the role of a (probabilistic) sampling mask in [0, 1]
    b = jax.random.uniform(kb, (2, 4, 16, 16), dtype=jnp.float32)

    # Force the Pallas path (min_pallas_bytes=0) so the kernel is exercised
    # even at this demo size; real callers keep the XLA fallback for tiny ops.
    out = jax.block_until_ready(undersample(a, b, min_pallas_bytes=0))
    ref = a * b
    assert out.shape == ref.shape and out.dtype == ref.dtype
    assert jnp.allclose(out, ref, atol=1e-6, rtol=1e-6)

    # Narrow (bf16) 0/1 sampling mask, same shape: widened in-kernel.
    mask = (jax.random.uniform(kc, (2, 4, 16, 16)) < 0.5).astype(jnp.bfloat16)
    out2 = jax.block_until_ready(undersample(a, mask, min_pallas_bytes=0))
    ref2 = a * mask
    assert out2.shape == ref2.shape and out2.dtype == ref2.dtype
    assert jnp.allclose(out2, ref2, atol=1e-6, rtol=1e-6)

    # Broadcast mask [1, 1, H, W]: not materialized over batch/channel.
    bmask = (jax.random.uniform(kd, (1, 1, 16, 16)) < 0.5).astype(jnp.float32)
    out3 = jax.block_until_ready(undersample(a, bmask, min_pallas_bytes=0))
    ref3 = a * bmask
    assert out3.shape == ref3.shape and out3.dtype == ref3.dtype
    assert jnp.allclose(out3, ref3, atol=1e-6, rtol=1e-6)

    # Lane-unfriendly element count (pads internally, slices back): 2*3*5*7.
    a4 = jax.random.normal(ka, (2, 3, 5, 7), dtype=jnp.float32)
    b4 = jax.random.uniform(kb, (2, 3, 5, 7), dtype=jnp.float32)
    out4 = jax.block_until_ready(undersample(a4, b4, min_pallas_bytes=0))
    ref4 = a4 * b4
    assert out4.shape == ref4.shape and out4.dtype == ref4.dtype
    assert jnp.allclose(out4, ref4, atol=1e-6, rtol=1e-6)

    print("KERNEL_OK")
</pallas_src>

<mosaic_0001>
module attributes {stable_mosaic.version = 11 : i64} {
  func.func @_undersample_kernel(%arg0: i32, %arg1: memref<1x2048xf32, #tpu.memory_space<vmem>>, %arg2: memref<1x2048xf32, #tpu.memory_space<vmem>>, %arg3: memref<1x2048xf32, #tpu.memory_space<vmem>>) attributes {dimension_semantics = [#tpu.dimension_semantics<parallel>], iteration_bounds = array<i64: 1>, scalar_prefetch = 0 : i64, scratch_operands = 0 : i64, tpu.core_type = #tpu.core_type<tc>, window_params = [{transform_indices = @transform_0, window_bounds = array<i64: 1, 2048>}, {transform_indices = @transform_1, window_bounds = array<i64: 1, 2048>}, {transform_indices = @transform_2, window_bounds = array<i64: 1, 2048>}]} {
    %c0 = arith.constant 0 : index
    %c0_0 = arith.constant 0 : index
    %0 = vector.load %arg1[%c0, %c0_0] : memref<1x2048xf32, #tpu.memory_space<vmem>>, vector<1x2048xf32>
    %c0_1 = arith.constant 0 : index
    %c0_2 = arith.constant 0 : index
    %1 = vector.load %arg2[%c0_1, %c0_2] : memref<1x2048xf32, #tpu.memory_space<vmem>>, vector<1x2048xf32>
    %2 = arith.mulf %0, %1 : vector<1x2048xf32>
    %c0_3 = arith.constant 0 : index
    %c0_4 = arith.constant 0 : index
    %3 = vector.load %arg3[%c0_3, %c0_4] : memref<1x2048xf32, #tpu.memory_space<vmem>>, vector<1x2048xf32>
    tpu.vector_store %arg3[%c0_3, %c0_4], %2 {strides = array<i32>} : memref<1x2048xf32, #tpu.memory_space<vmem>>, vector<1x2048xf32>,
    return
  }
  func.func @transform_0(%arg0: i32) -> (i32, i32) {
    %c0_i32 = arith.constant 0 : i32
    %c0_i32_0 = arith.constant 0 : i32
    return %arg0, %c0_i32 : i32, i32
  }
  func.func @transform_1(%arg0: i32) -> (i32, i32) {
    %c0_i32 = arith.constant 0 : i32
    %c0_i32_0 = arith.constant 0 : i32
    return %arg0, %c0_i32 : i32, i32
  }
  func.func @transform_2(%arg0: i32) -> (i32, i32) {
    %c0_i32 = arith.constant 0 : i32
    %c0_i32_0 = arith.constant 0 : i32
    return %arg0, %c0_i32 : i32, i32
  }
}

</mosaic_0001>

<bundles_post_ra>
// kernel: tpu_custom_call.1
= control target key start
LH: loop header
LB: loop body
LE: loop exit
PB: predicated region body
PF: predicated region fallthrough
CT: control target
= control target key end

     0   :  { %7 = vsyncpa [#allocation3], 0  ;;  %s174_s0 = inlined_call_operand.hbm [shape: f32[1,2048], index: 0, kind: input, shape index: {}]   ;;  %s175_s1 = inlined_call_operand.hbm [shape: f32[1,2048], index: 1, kind: input, shape index: {}]   ;;  %s176_s2 = inlined_call_operand.hbm [shape: f32[1,2048], index: 2, kind: output, shape index: {}]  }
   0x1   :  { %8 = vsyncpa [#allocation6], 0 }
   0x2   :  { %9 = vsyncpa [#allocation4], 0  ;;  %s15_s11 = sshll.u32 %s174_s0, 4  ;;  %s147_s12 = smov [#allocation2]   ;;  %s16_s11 = int_to_ptr.hbm [resolvable:$true] %s15_s11 }
   0x3   :  { %s17_s13 = sshll.u32 %s147_s12, 4  ;;  %s26_s16 = sshll.u32 %s175_s1, 4  ;;  %s18_s13 = int_to_ptr.vmem [resolvable:$true] %s17_s13  ;;  %s27_s16 = int_to_ptr.hbm [resolvable:$true] %s26_s16 }
   0x4   :  { %20 = dma.hbm_to_vmem [thread:$0]  %s16_s11, 256, %s18_s13, [#allocation3]  }
   0x5   :  { %s148_s17 = smov [#allocation5]  }
   0x6   :  { %s28_s18 = sshll.u32 %s148_s17, 4  ;;  %s29_s18 = int_to_ptr.vmem [resolvable:$true] %s28_s18 }
   0x7   :  { %31 = dma.hbm_to_vmem [thread:$0]  %s27_s16, 256, %s29_s18, [#allocation6]  }
   0x8   :  { %141 = dma.done.wait [#allocation3], 256  }
   0x9   :  { %142 = vsyncadd [#allocation3], 4294967040 }
   0xa   :  { %143 = dma.done.wait [#allocation6], 256  }
   0xb   :  { %144 = vsyncadd [#allocation6], 4294967040  ;;  %s149_s19 = smov [#allocation7]   ;;  %s55_s22 = sshll.u32 %s176_s2, 4  ;;  %v40_v0 = vld [vmem:[#allocation2] sm:$0xff]  ;;  %v42_v1 = vld [vmem:[#allocation5] sm:$0xff]  ;;  %s56_s22 = int_to_ptr.hbm [resolvable:$true] %s55_s22 }
   0xc   :  { %s53_s0 = sshll.u32 %s149_s19, 4  ;;  %v41_v2 = vld [vmem:[#allocation2 + $0x8] sm:$0xff]  ;;  %v44_v3 = vmul.f32 %v42_v1, %v40_v0  ;;  %v43_v4 = vld [vmem:[#allocation5 + $0x8] sm:$0xff]  ;;  %s54_s0 = int_to_ptr.vmem [resolvable:$true] %s53_s0 }
   0xd   :  { %v45_v5 = vmul.f32 %v43_v4, %v41_v2 }
   0xe   :  { %46 = vst [vmem:[#allocation7] sm:$0xff] %v44_v3 }
   0xf   :  { %47 = vst [vmem:[#allocation7 + $0x8] sm:$0xff] %v45_v5 }
  0x10   :  { %58 = dma.vmem_to_hbm [thread:$0]  %s54_s0, 256, %s56_s22, [#allocation4]  }
  0x11   :  { %145 = dma.done.wait [#allocation4], 256  }
  0x12   :  { %146 = vsyncadd [#allocation4], 4294967040 }
  0x13   :  { %63 = vsyncpa [#allocation3], 1 }
  0x14   :  { %64 = vsyncpa [#allocation6], 1 }
  0x15   :  { %65 = vsyncpa [#allocation4], 1 }

</bundles_post_ra>
